<compile_context>
chip_gen: v7x
topology: tpu7x:2x2x1
jax: 0.10.0
libtpu: 0.0.40
codegen_flags: <defaults>
</compile_context>

<pallas_src>
import functools

import jax
import jax.numpy as jnp
from jax import lax
from jax.experimental import pallas as pl
from jax.experimental.pallas import tpu as pltpu


# ------------------------------- kernels ------------------------------------


def _conv1x1_nhwc_kernel(x_ref, w_ref, b_ref, o_ref):
    # x_ref: (C, ts)   w_ref: (Cout, C)   b_ref: (1, Cout)   o_ref: (ts, Cout)
    # Contract x dim 0 (C) with w dim 1 (C) -> (ts, Cout); f32 MXU accumulation.
    acc = lax.dot_general(
        x_ref[...],
        w_ref[...],
        dimension_numbers=(((0,), (1,)), ((), ())),
        preferred_element_type=jnp.float32,
    )
    o_ref[...] = (acc + b_ref[...]).astype(o_ref.dtype)


def _conv1x1_nchw_kernel(x_ref, w_ref, b_ref, o_ref):
    # Lane-dense fallback.  x_ref: (C, ts)  w_ref: (Cout, C)  b_ref: (Cout, 1)
    # o_ref: (Cout, ts)
    acc = jnp.dot(w_ref[...], x_ref[...], preferred_element_type=jnp.float32)
    o_ref[...] = (acc + b_ref[...]).astype(o_ref.dtype)


# ------------------------------ tiling logic ---------------------------------


def _round_up(x, m):
    return ((x + m - 1) // m) * m


def _vmem_capacity_bytes():
    """Trace-time physical VMEM capacity; conservative fallback if unknown."""
    try:
        info = pltpu.get_tpu_info()
        cap = getattr(info, "vmem_capacity_bytes", None)
        if cap:
            return int(cap)
    except Exception:  # pragma: no cover - host tracing / older runtimes
        pass
    return 64 * 1024 * 1024  # conservative (v7x per-TensorCore)


def _pick_spatial_tile(hw, c, cout, itemsize, batch, vmem_budget):
    """Largest legal spatial (lane) tile that fits the VMEM budget, split so
    the grid has >= 2 spatial steps (>= 4 for batch==1): both v7x TensorCores
    get work and double-buffering can actually overlap."""
    if hw <= 128:
        return hw  # whole spatial extent: always a legal block shape
    # Double-buffered input block + output block, bytes per spatial column.
    per_col = 2 * (c + cout) * itemsize
    cap = (vmem_budget // max(per_col, 1)) // 128 * 128
    cap = max(128, min(4096, cap))
    want_tiles = 4 if batch == 1 else 2
    ts = _round_up(pl.cdiv(hw, want_tiles), 128)
    return max(128, min(ts, cap))


# -------------------------------- wrapper ------------------------------------


def landmark_head(x_nchw, weight, bias, num_anchors=3, spatial_tile=None,
                  fused_output_layout=True):
    """RetinaFace LandmarkHead forward.

    x_nchw : (N, C, H, W) activation (pass bf16 to halve HBM reads; no extra
             cast pass is inserted here).
    weight : PyTorch Conv2d weight, (Cout, C, 1, 1) or (Cout, C), Cout = A*10.
    bias   : (Cout,).
    fused_output_layout : True -> kernel stores (N, HW, Cout) directly (no
             post-kernel transpose pass).  False -> lane-dense (Cout, ts)
             blocks + an external transpose (v5e fallback).
    """
    N, C, H, W = x_nchw.shape
    w2d = weight.reshape(weight.shape[0], weight.shape[1]) if weight.ndim == 4 else weight
    Cout = w2d.shape[0]
    assert w2d.shape == (Cout, C), "weight must be (Cout, C[,1,1]) (PyTorch Conv2d layout)"
    assert Cout == num_anchors * 10

    HW = H * W
    out_dtype = x_nchw.dtype

    # Free reshape: stays NCHW-contiguous in HBM, no transpose / extra HBM trip.
    x3 = x_nchw.reshape(N, C, HW)
    # Weight is tiny: match the activation dtype for the MXU; accumulate f32.
    w2d = w2d.astype(x3.dtype)

    itemsize = jnp.dtype(x3.dtype).itemsize
    out_itemsize = jnp.dtype(out_dtype).itemsize

    # Generation-aware VMEM: 64 MiB limit on v5e/v6e (128 MiB physical),
    # 32 MiB on v7x (64 MiB physical); tile budget leaves headroom.
    vmem_cap = _vmem_capacity_bytes()
    vmem_limit = int(min(64 * 1024 * 1024, max(32 * 1024 * 1024, vmem_cap // 2)))
    tile_budget = (vmem_limit * 3) // 4

    if spatial_tile is not None:
        if not (spatial_tile == HW or spatial_tile % 128 == 0):
            raise ValueError(
                f"spatial_tile={spatial_tile} must be a multiple of 128 or equal HW={HW}")
        ts = spatial_tile
    else:
        ts = _pick_spatial_tile(HW, C, Cout, itemsize, N, tile_budget)

    grid = (N, pl.cdiv(HW, ts))

    cost = pl.CostEstimate(
        flops=2 * N * HW * C * Cout,
        transcendentals=0,
        bytes_accessed=itemsize * (N * HW * C + C * Cout) + 4 * Cout
        + out_itemsize * N * HW * Cout,
    )
    cparams = pltpu.CompilerParams(
        dimension_semantics=("parallel", "parallel"),
        vmem_limit_bytes=vmem_limit,
    )

    if fused_output_layout:
        b_row = bias.astype(jnp.float32).reshape(1, Cout)
        out_nhwc = pl.pallas_call(
            _conv1x1_nhwc_kernel,
            out_shape=jax.ShapeDtypeStruct((N, HW, Cout), out_dtype),
            grid_spec=pltpu.PrefetchScalarGridSpec(
                num_scalar_prefetch=0,
                grid=grid,
                in_specs=[
                    # batch dim squeezed; (C, ts) block read in native NCHW layout.
                    pl.BlockSpec((None, C, ts), lambda n, j: (n, 0, j)),
                    pl.BlockSpec((Cout, C), lambda n, j: (0, 0)),
                    pl.BlockSpec((1, Cout), lambda n, j: (0, 0)),
                ],
                # Output already in NHWC-flat layout -> no post-kernel transpose.
                out_specs=pl.BlockSpec((None, ts, Cout), lambda n, j: (n, j, 0)),
            ),
            compiler_params=cparams,
            cost_estimate=cost,
        )(x3, w2d, b_row)
        # (N, HW, A*10) -> (N, H*W*A, 10): free reshape, identical to
        # permute(0,2,3,1).contiguous().view(N, -1, 10).
        return out_nhwc.reshape(N, HW * num_anchors, 10)

    # Lane-dense fallback (v5e): big spatial tile on lanes, transpose the SMALL
    # (N, Cout, HW) output afterwards.
    b_col = bias.astype(jnp.float32).reshape(Cout, 1)
    out_nchw = pl.pallas_call(
        _conv1x1_nchw_kernel,
        out_shape=jax.ShapeDtypeStruct((N, Cout, HW), out_dtype),
        grid_spec=pltpu.PrefetchScalarGridSpec(
            num_scalar_prefetch=0,
            grid=grid,
            in_specs=[
                pl.BlockSpec((None, C, ts), lambda n, j: (n, 0, j)),
                pl.BlockSpec((Cout, C), lambda n, j: (0, 0)),
                pl.BlockSpec((Cout, 1), lambda n, j: (0, 0)),
            ],
            out_specs=pl.BlockSpec((None, Cout, ts), lambda n, j: (n, 0, j)),
        ),
        compiler_params=cparams,
        cost_estimate=cost,
    )(x3, w2d, b_col)
    out_nhwc = jnp.transpose(out_nchw, (0, 2, 1))
    return out_nhwc.reshape(N, HW * num_anchors, 10)


# --------------------------------- test ---------------------------------------


if __name__ == "__main__":
    # Small deterministic shapes consistent with the module.
    N, C, H, W = 2, 32, 16, 16
    num_anchors = 3
    Cout = num_anchors * 10

    key = jax.random.PRNGKey(0)
    kx, kw, kb = jax.random.split(key, 3)

    x = jax.random.normal(kx, (N, C, H, W), dtype=jnp.float32)
    # PyTorch Conv2d weight layout: (Cout, C, 1, 1)
    weight = jax.random.normal(kw, (Cout, C, 1, 1), dtype=jnp.float32) * 0.05
    bias = jax.random.normal(kb, (Cout,), dtype=jnp.float32) * 0.05

    # Plain-JAX reference (same math, no Pallas).
    w2 = weight.reshape(Cout, C)
    ref = jnp.einsum("nchw,oc->nhwo", x, w2) + bias
    ref = ref.reshape(N, H * W * num_anchors, 10)

    # Default: fused NHWC output layout (no post-kernel transpose pass).
    run = jax.jit(functools.partial(landmark_head, num_anchors=num_anchors))
    out = jax.block_until_ready(run(x, weight, bias))
    assert out.shape == (N, H * W * num_anchors, 10)
    assert jnp.allclose(out, ref, atol=1e-4, rtol=1e-4)

    # Lane-dense fallback path (v5e option) must match too.
    run_fb = jax.jit(functools.partial(landmark_head, num_anchors=num_anchors,
                                       fused_output_layout=False))
    out_fb = jax.block_until_ready(run_fb(x, weight, bias))
    assert jnp.allclose(out_fb, ref, atol=1e-4, rtol=1e-4)

    # bf16 activations arriving from the previous layer (no extra cast pass
    # inside landmark_head): f32 accumulation, looser tolerance.
    out_bf16 = jax.block_until_ready(run(x.astype(jnp.bfloat16), weight, bias))
    assert jnp.allclose(out_bf16.astype(jnp.float32), ref, atol=5e-2, rtol=5e-2)

    print("KERNEL_OK")
</pallas_src>

<mosaic_0001>
module attributes {stable_mosaic.version = 11 : i64} {
  func.func @_conv1x1_nhwc_kernel(%arg0: i32, %arg1: i32, %arg2: memref<1x32x128xf32, #tpu.memory_space<vmem>>, %arg3: memref<30x32xf32, #tpu.memory_space<vmem>>, %arg4: memref<1x30xf32, #tpu.memory_space<vmem>>, %arg5: memref<1x128x30xf32, #tpu.memory_space<vmem>>) attributes {dimension_semantics = [#tpu.dimension_semantics<parallel>, #tpu.dimension_semantics<parallel>], iteration_bounds = array<i64: 2, 2>, scalar_prefetch = 0 : i64, scratch_operands = 0 : i64, tpu.core_type = #tpu.core_type<tc>, window_params = [{transform_indices = @transform_0, window_bounds = array<i64: 1, 32, 128>}, {pipeline_mode = #tpu.pipeline_mode<synchronous>, transform_indices = @transform_1, window_bounds = array<i64: 30, 32>}, {pipeline_mode = #tpu.pipeline_mode<synchronous>, transform_indices = @transform_2, window_bounds = array<i64: 1, 30>}, {transform_indices = @transform_3, window_bounds = array<i64: 1, 128, 30>}]} {
    %c0 = arith.constant 0 : index
    %c0_0 = arith.constant 0 : index
    %c0_1 = arith.constant 0 : index
    %0 = vector.load %arg2[%c0, %c0_0, %c0_1] : memref<1x32x128xf32, #tpu.memory_space<vmem>>, vector<1x32x128xf32>
    %1 = vector.shape_cast %0 : vector<1x32x128xf32> to vector<32x128xf32>
    %c0_2 = arith.constant 0 : index
    %c0_3 = arith.constant 0 : index
    %2 = vector.load %arg3[%c0_2, %c0_3] : memref<30x32xf32, #tpu.memory_space<vmem>>, vector<30x32xf32>
    %cst = arith.constant dense<0.000000e+00> : vector<128x30xf32>
    %3 = tpu.matmul %1, %2, %cst {dimension_numbers = #tpu.dot_dimension_numbers<[0], [1], [1], [0], [0, 1, 1, 0], [], []>} : vector<32x128xf32>, vector<30x32xf32>, vector<128x30xf32> -> vector<128x30xf32>
    %c0_4 = arith.constant 0 : index
    %c0_5 = arith.constant 0 : index
    %4 = vector.load %arg4[%c0_4, %c0_5] : memref<1x30xf32, #tpu.memory_space<vmem>>, vector<1x30xf32>
    %5 = vector.broadcast %4 : vector<1x30xf32> to vector<128x30xf32>
    %6 = arith.addf %3, %5 : vector<128x30xf32>
    %c0_6 = arith.constant 0 : index
    %c0_7 = arith.constant 0 : index
    %c0_8 = arith.constant 0 : index
    %7 = vector.load %arg5[%c0_6, %c0_7, %c0_8] : memref<1x128x30xf32, #tpu.memory_space<vmem>>, vector<1x128x30xf32>
    %8 = vector.shape_cast %7 : vector<1x128x30xf32> to vector<128x30xf32>
    %9 = vector.shape_cast %6 : vector<128x30xf32> to vector<1x128x30xf32>
    tpu.vector_store %arg5[%c0_6, %c0_7, %c0_8], %9 {strides = array<i32>} : memref<1x128x30xf32, #tpu.memory_space<vmem>>, vector<1x128x30xf32>,
    return
  }
  func.func @transform_0(%arg0: i32, %arg1: i32) -> (i32, i32, i32) {
    %c0_i32 = arith.constant 0 : i32
    %c0_i32_0 = arith.constant 0 : i32
    return %arg0, %c0_i32, %arg1 : i32, i32, i32
  }
  func.func @transform_1(%arg0: i32, %arg1: i32) -> (i32, i32) {
    %c0_i32 = arith.constant 0 : i32
    %c0_i32_0 = arith.constant 0 : i32
    %c0_i32_1 = arith.constant 0 : i32
    return %c0_i32, %c0_i32_0 : i32, i32
  }
  func.func @transform_2(%arg0: i32, %arg1: i32) -> (i32, i32) {
    %c0_i32 = arith.constant 0 : i32
    %c0_i32_0 = arith.constant 0 : i32
    %c0_i32_1 = arith.constant 0 : i32
    return %c0_i32, %c0_i32_0 : i32, i32
  }
  func.func @transform_3(%arg0: i32, %arg1: i32) -> (i32, i32, i32) {
    %c0_i32 = arith.constant 0 : i32
    %c0_i32_0 = arith.constant 0 : i32
    return %arg0, %arg1, %c0_i32 : i32, i32, i32
  }
}

</mosaic_0001>

<bundles_post_ra>
// kernel: landmark_head.1
= control target key start
LH: loop header
LB: loop body
LE: loop exit
PB: predicated region body
PF: predicated region fallthrough
CT: control target
= control target key end

     0   :  { %s842_s12 = smov 0   ;;  %s844_s13 = smov 0   ;;  %s1019_s0 = inlined_call_operand.vmem [shape: f32[2,32,256], index: 0, kind: input, shape index: {}]   ;;  %s1020_s1 = inlined_call_operand.vmem [shape: f32[30,32], index: 1, kind: input, shape index: {}]   ;;  %s1021_s2 = inlined_call_operand.vmem [shape: f32[1,30], index: 2, kind: input, shape index: {}]   ;;  %s1022_s3 = inlined_call_operand.vmem [shape: f32[2,256,30], index: 3, kind: output, shape index: {}]  }
   0x1   :  { %s846_s14 = smov 0   ;;  %s848_s15 = smov 0  }
   0x2   :  { %s850_s16 = smov 0   ;;  %s852_s17 = smov 0  }
   0x3   :  { %s854_s18 = smov 0  }
   0x4 LB: > { %s22_s19 = sadd.s32 1, %s812_s16  ;;  %s25_s20 = sadd.s32 1, %s816_s17  ;;  %s820_s18 = sphi %s854_s18, %s13_s18   ;;  %s816_s17 = sphi %s852_s17, %s1030_s17   ;;  %s812_s16 = sphi %s850_s16, %s1029_s16   ;;  %s808_s15 = sphi %s848_s15, %s1028_s15   ;;  %s804_s14 = sphi %s846_s14, %s1027_s14   ;;  %s800_s13 = sphi %s844_s13, %s1026_s13   ;;  %s796_s12 = sphi %s842_s12, %s1025_s12  }
   0x5   : > { %p23_p0 = scmp.ge.s32.totalorder %s22_s19, 2  ;;  %p41_p1 = scmp.ne.s32.totalorder %s800_s13, %s796_s12 }
   0x6   : > { %p42_p2 = scmp.eq.s32.totalorder %s820_s18, 0  ;;  %s34_s24 = sadd.s32 1, %s800_s13 }
   0x7   : > { %s1032_s19 = smov (%p23_p0, %s22_s19), 0  ;;  %s1034_s20 = smov (!%p23_p0, %s25_s20), %s816_s17 }
   0x8   : > { %p43_p3 = por %p42_p2, %p41_p1  ;;  %p27_p4 = scmp.ge.s32.totalorder %s1034_s20, 2 }
   0x9   : > { %s30_s21 = ssub.s32 %s812_s16, %s1032_s19  ;;  %p609_p6 = scmp.ge.s32.totalorder %s820_s18, 4 }
   0xa   : > { %s1036_s20 = smov (%p27_p4, %s1034_s20), 0 }
   0xb   : > { %s29_s22 = ssub.s32 %s816_s17, %s1036_s20  ;;  %143 = sbr.rel (%p609_p6) target bundleno = 26 (0x1a), region = 24 }
   0xc   : > { %s31_s23 = sor.u32 %s30_s21, %s29_s22 }
   0xd   : > { %p32_p5 = scmp.eq.s32.totalorder %s31_s23, 0 }
   0xf   : > { %s893_s25 = scalar_select %p32_p5, %s800_s13, %s34_s24  }
  0x12   : > { %146 = sbr.rel (!%p43_p3) target bundleno = 26 (0x1a), region = 28  ;;  %s148_s26 = sand.u32 (%p43_p3), 1, %s800_s13  }
  0x13   : > { %s611_s27 = sshll.u32 (%p43_p3), %s816_s17, 3  ;;  %s610_s28 = sshll.u32 (%p43_p3), %s148_s26, 5 }
  0x14   : > { %s152_s29 = sadd.s32 (%p43_p3), %s812_s16, %s611_s27  ;;  %s150_s7 = scalar_lea.vmem (%p43_p3), [#allocation2], %s610_s28 }
  0x15   : > { %s612_s30 = sshll.u32 (%p43_p3), %s152_s29, 3 }
  0x16   : > { %s154_s6 = scalar_lea.vmem (%p43_p3), %s1019_s0, %s612_s30 }
  0x17   : > { %v188_v0 = vld [vmem:[%s154_s6] sm:$0xff] (%p43_p3)  ;;  %v190_v1 = vld [vmem:[%s154_s6 + $0x10] sm:$0xff] (%p43_p3) }
  0x18   : > { %v192_v2 = vld [vmem:[%s154_s6 + $0x20] sm:$0xff] (%p43_p3)  ;;  %189 = vst [vmem:[%s150_s7] sm:$0xff] (%p43_p3), %v188_v0  ;;  %191 = vst [vmem:[%s150_s7 + $0x8] sm:$0xff] (%p43_p3), %v190_v1  ;;  %v194_v3 = vld [vmem:[%s154_s6 + $0x30] sm:$0xff] (%p43_p3) }
  0x19   : > { %193 = vst [vmem:[%s150_s7 + $0x10] sm:$0xff] %v192_v2  ;;  %195 = vst [vmem:[%s150_s7 + $0x18] sm:$0xff] %v194_v3 }
  0x1a PF: > { %p613_p7 = scmp.ge.s32.totalorder %s820_s18, 1  ;;  %p200_p8 = scmp.lt.s32.totalorder %s820_s18, 5 }
  0x1c   : > { %p201_p9 = pnand %p613_p7, %p200_p8 }
  0x1d   : > { %s207_s8 = sand.u32 (!%p201_p9), 1, %s796_s12   ;;  %v248_v4 = vld [vmem:[%s1020_s1] sm:$0xff] (!%p201_p9)  ;;  %v249_v5 = vld [vmem:[%s1020_s1 + $0x8] sm:$0xff] (!%p201_p9)  ;;  %vm291_vm0 = vcmask (!%p201_p9), 261120   ;;  %v250_v6 = vld [vmem:[%s1020_s1 + $0x10] sm:$0xff] (!%p201_p9)  ;;  %s615_s28 = sshll.u32 (!%p201_p9), %s804_s14, 4 }
  0x1e   : > { %204 = sbr.rel (%p201_p9) target bundleno = 438 (0x1b6), region = 66  ;;  %s614_s24 = sshll.u32 (!%p201_p9), %s207_s8, 5  ;;  %v693_v7 = vpack.c.bf16 (!%p201_p9), %v249_v5, %v248_v4  ;;  %vm916_vm1 = vmpackc.low (!%p201_p9), %vm291_vm0, %vm291_vm0  ;;  %v251_v9 = vld [vmem:[%s1020_s1 + $0x18] sm:$0x3f] (!%p201_p9)  ;;  %v618_v31 = vld [vmem:[%s1021_s2] ss:$0 sm:$0xff] (!%p201_p9) }
  0x1f   : > { %v699_v10 = vpack.c.bf16 (!%p201_p9), %v251_v9, %v250_v6  ;;  %s209_s27 = scalar_lea.vmem (!%p201_p9), [#allocation2], %s614_s24  ;;  %p235_p10 = scmp.lt.s32.totalorder (!%p201_p9), %s808_s15, 1  ;;  %vm497_vm2 = vcmask (!%p201_p9), 244736  }
  0x20   : > { %v244_v11 = vld [vmem:[%s209_s27] sm:$0xff] (!%p201_p9)  ;;  %695 = vmatprep.subr.msk.bf16.mxu0 (!%p201_p9), %vm916_vm1, %v693_v7  ;;  %705 = vmatprep.subr.msk.bf16.mxu1 (!%p201_p9), %vm916_vm1, %v693_v7  ;;  %v245_v12 = vld [vmem:[%s209_s27 + $0x8] sm:$0xff] (!%p201_p9)  ;;  %v246_v13 = vld [vmem:[%s209_s27 + $0x10] sm:$0xff] (!%p201_p9)  ;;  %p237_p11 = scmp.lt.s32.totalorder (!%p201_p9), %s615_s28, 31 }
  0x21   : > { %259 = vxpose.xlu0.b32.start [1/4] (short) (!%p201_p9), %v244_v11, 128  ;;  %698 = vmatpush3.bf16.xpose.msk.msra.mxu0 (!%p201_p9), %vm916_vm1, %v693_v7  ;;  %v247_v14 = vld [vmem:[%s209_s27 + $0x18] sm:$0xff] (!%p201_p9) }
  0x22   : > { %701 = vmatprep.subr.msk.bf16.mxu0 (!%p201_p9), %vm916_vm1, %v699_v10  ;;  %707 = vmatpush3.bf16.xpose.msk.msra.mxu1 (!%p201_p9), %vm916_vm1, %v693_v7 }
  0x23   : > { %706 = vmatprep.subr.msk.bf16.mxu1 (!%p201_p9), %vm916_vm1, %v699_v10 }
  0x25   : > { %260 = vxpose.xlu0.b32.cont [2/4] (short) %v245_v12, 128  ;;  %s1038_s15 = smov (!%p235_p10, %s808_s15), 1  ;;  %s1040_s28 = smov (!%p237_p11, %s615_s28), 31 }
  0x26   : > { %s616_s29 = sshll.u32 %s1038_s15, 5 }
  0x27   : > { %s240_s30 = sadd.s32 %s616_s29, %s1040_s28 }
  0x28   : > { %s617_s4 = sshll.u32 %s240_s30, 3 }
  0x29   : > { %261 = vxpose.xlu0.b32.cont [3/4] (short) %v246_v13, 128  ;;  %704 = vmatpush3.bf16.xpose.msk.msra.mxu0 %vm916_vm1, %v699_v10  ;;  %s964_s9 = scalar_lea.vmem %s1022_s3, %s617_s4 }
  0x2a   : > { %708 = vmatpush3.bf16.xpose.msk.msra.mxu1 %vm916_vm1, %v699_v10 }
  0x2d   : > { %262 = vxpose.xlu0.b32.end [4/4] (short) %v247_v14, 128 }
  0xa1   : > { %v275_v15 = vpop.trf.xlu0 }
  0xa2   : > { %669 = vmatprep.mubr.msk.f32.mxu0 %vm291_vm0, %v275_v15 }
  0xa5   : > { %v276_v16 = vpop.trf.xlu0 }
  0xa6   : > { %670 = vmatmul.mubr.msk.f32.vlgmr.msra.gmra.mrb[0].mxu0 %vm291_vm0, %v276_v16 }
  0xa9   : > { %v277_v17 = vpop.trf.xlu0 }
  0xaa   : > { %672 = vmatprep.mubr.msk.f32.mxu0 %vm291_vm0, %v277_v17 }
  0xad   : > { %v278_v18 = vpop.trf.xlu0 }
  0xae   : > { %673 = vmatmul.mubr.msk.f32.gmra.mrb[2].mxu0 %vm291_vm0, %v278_v18 }
  0xb1   : > { %v279_v19 = vpop.trf.xlu0 }
  0xb2   : > { %675 = vmatprep.mubr.msk.f32.mxu0 %vm291_vm0, %v279_v19 }
  0xb5   : > { %v280_v20 = vpop.trf.xlu0 }
  0xb6   : > { %676 = vmatmul.mubr.msk.f32.gmra.mrb[4].mxu0 %vm291_vm0, %v280_v20 }
  0xb9   : > { %v281_v21 = vpop.trf.xlu0 }
  0xba   : > { %678 = vmatprep.mubr.msk.f32.mxu0 %vm291_vm0, %v281_v21 }
  0xbd   : > { %v282_v22 = vpop.trf.xlu0 }
  0xbe   : > { %679 = vmatmul.mubr.msk.f32.gmra.mrb[6].mxu0 %vm291_vm0, %v282_v22 }
  0xc1   : > { %v283_v23 = vpop.trf.xlu0 }
  0xc2   : > { %681 = vmatprep.mubr.msk.f32.mxu1 %vm291_vm0, %v283_v23 }
  0xc5   : > { %v284_v24 = vpop.trf.xlu0 }
  0xc6   : > { %682 = vmatmul.mubr.msk.f32.vlgmr.msra.gmra.mrb[0].mxu1 %vm291_vm0, %v284_v24 }
  0xc9   : > { %v285_v25 = vpop.trf.xlu0 }
  0xca   : > { %684 = vmatprep.mubr.msk.f32.mxu1 %vm291_vm0, %v285_v25 }
  0xcd   : > { %v286_v26 = vpop.trf.xlu0 }
  0xce   : > { %685 = vmatmul.mubr.msk.f32.gmra.mrb[2].mxu1 %vm291_vm0, %v286_v26 }
  0xd1   : > { %v287_v27 = vpop.trf.xlu0 }
  0xd2   : > { %687 = vmatprep.mubr.msk.f32.mxu1 %vm291_vm0, %v287_v27 }
  0xd5   : > { %v288_v28 = vpop.trf.xlu0 }
  0xd6   : > { %688 = vmatmul.mubr.msk.f32.gmra.mrb[4].mxu1 %vm291_vm0, %v288_v28 }
  0xd9   : > { %v289_v29 = vpop.trf.xlu0 }
  0xda   : > { %690 = vmatprep.mubr.msk.f32.mxu1 %vm291_vm0, %v289_v29 }
  0xdd   : > { %v290_v30 = vpop.trf.xlu0 }
  0xde   : > { %691 = vmatmul.mubr.msk.f32.gmra.mrb[6].mxu1 %vm291_vm0, %v290_v30 }
 0x179   : > { %v671_v32 = vpop.f32.mrb[0].mxu0 }
 0x17a   : > { %v424_v33 = vadd.f32 %v671_v32, %v618_v31  ;;  %v418_v34 = vpop.f32.mrb[1].mxu0 }
 0x17b   : > { %v419_v35 = vadd.f32 %v618_v31, %v418_v34 }
 0x17c   : > { %499 = vst.msk [vmem:[%s964_s9 + $0x8] sm:$0xff] %vm497_vm2, %v424_v33 }
 0x17d   : > { %498 = vst.msk [vmem:[%s964_s9] sm:$0xff] %vm497_vm2, %v419_v35 }
 0x181   : > { %v674_v36 = vpop.f32.mrb[2].mxu0 }
 0x182   : > { %v434_v37 = vadd.f32 %v674_v36, %v618_v31  ;;  %v428_v38 = vpop.f32.mrb[3].mxu0 }
 0x183   : > { %v429_v39 = vadd.f32 %v618_v31, %v428_v38 }
 0x184   : > { %501 = vst.msk [vmem:[%s964_s9 + $0x18] sm:$0xff] %vm497_vm2, %v434_v37 }
 0x185   : > { %500 = vst.msk [vmem:[%s964_s9 + $0x10] sm:$0xff] %vm497_vm2, %v429_v39 }
 0x189   : > { %v677_v40 = vpop.f32.mrb[4].mxu0 }
 0x18a   : > { %v444_v41 = vadd.f32 %v677_v40, %v618_v31  ;;  %v438_v42 = vpop.f32.mrb[5].mxu0 }
 0x18b   : > { %v439_v43 = vadd.f32 %v618_v31, %v438_v42 }
 0x18c   : > { %503 = vst.msk [vmem:[%s964_s9 + $0x28] sm:$0xff] %vm497_vm2, %v444_v41 }
 0x18d   : > { %502 = vst.msk [vmem:[%s964_s9 + $0x20] sm:$0xff] %vm497_vm2, %v439_v43 }
 0x191   : > { %v680_v44 = vpop.f32.mrb[6].mxu0 }
 0x192   : > { %v454_v45 = vadd.f32 %v680_v44, %v618_v31  ;;  %v448_v46 = vpop.f32.mrb[7].mxu0 }
 0x193   : > { %v449_v47 = vadd.f32 %v618_v31, %v448_v46 }
 0x194   : > { %505 = vst.msk [vmem:[%s964_s9 + $0x38] sm:$0xff] %vm497_vm2, %v454_v45 }
 0x195   : > { %504 = vst.msk [vmem:[%s964_s9 + $0x30] sm:$0xff] %vm497_vm2, %v449_v47 }
 0x199   : > { %v683_v48 = vpop.f32.mrb[0].mxu1 }
 0x19a   : > { %v464_v49 = vadd.f32 %v683_v48, %v618_v31  ;;  %v458_v50 = vpop.f32.mrb[1].mxu1 }
 0x19b   : > { %v459_v51 = vadd.f32 %v618_v31, %v458_v50 }
 0x19c   : > { %507 = vst.msk [vmem:[%s964_s9 + $0x48] sm:$0xff] %vm497_vm2, %v464_v49 }
 0x19d   : > { %506 = vst.msk [vmem:[%s964_s9 + $0x40] sm:$0xff] %vm497_vm2, %v459_v51 }
 0x1a1   : > { %v686_v52 = vpop.f32.mrb[2].mxu1 }
 0x1a2   : > { %v474_v53 = vadd.f32 %v686_v52, %v618_v31  ;;  %v468_v54 = vpop.f32.mrb[3].mxu1 }
 0x1a3   : > { %v469_v55 = vadd.f32 %v618_v31, %v468_v54 }
 0x1a4   : > { %509 = vst.msk [vmem:[%s964_s9 + $0x58] sm:$0xff] %vm497_vm2, %v474_v53 }
 0x1a5   : > { %508 = vst.msk [vmem:[%s964_s9 + $0x50] sm:$0xff] %vm497_vm2, %v469_v55 }
 0x1a9   : > { %v689_v56 = vpop.f32.mrb[4].mxu1 }
 0x1aa   : > { %v484_v57 = vadd.f32 %v689_v56, %v618_v31  ;;  %v478_v58 = vpop.f32.mrb[5].mxu1 }
 0x1ab   : > { %v479_v59 = vadd.f32 %v618_v31, %v478_v58 }
 0x1ac   : > { %511 = vst.msk [vmem:[%s964_s9 + $0x68] sm:$0xff] %vm497_vm2, %v484_v57 }
 0x1ad   : > { %510 = vst.msk [vmem:[%s964_s9 + $0x60] sm:$0xff] %vm497_vm2, %v479_v59 }
 0x1b1   : > { %v692_v60 = vpop.f32.mrb[6].mxu1 }
 0x1b2   : > { %v494_v61 = vadd.f32 %v692_v60, %v618_v31  ;;  %v488_v62 = vpop.f32.mrb[7].mxu1 }
 0x1b3   : > { %v489_v63 = vadd.f32 %v618_v31, %v488_v62 }
 0x1b4   : > { %513 = vst.msk [vmem:[%s964_s9 + $0x78] sm:$0xff] %vm497_vm2, %v494_v61 }
 0x1b5   : > { %512 = vst.msk [vmem:[%s964_s9 + $0x70] sm:$0xff] %vm497_vm2, %v489_v63 }
 0x1b6 PF: > { %s13_s18 = sadd.s32 1, %s820_s18   ;;  %s1025_s12 = smov %s800_s13 }
 0x1b7   : > { %p10_p12 = scmp.ge.s32.totalorder %s13_s18, 6   ;;  %s1026_s13 = smov %s893_s25 }
 0x1b8   : > { %s1027_s14 = smov %s812_s16  ;;  %s1028_s15 = smov %s816_s17 }
 0x1b9   : > { %s1029_s16 = smov %s1032_s19  ;;  %s1030_s17 = smov %s1036_s20 }
 0x1ba   :  { %12 = sbr.rel (!%p10_p12) target bundleno = 4 (0x4), region = 105 }

</bundles_post_ra>
